<compile_context>
chip_gen: v5e
topology: v5e:2x2
jax: 0.10.0
libtpu: 0.0.40
codegen_flags: <defaults>
</compile_context>

<pallas_src>
import functools

import jax
import jax.numpy as jnp
from jax.experimental import pallas as pl
from jax.experimental.pallas import tpu as pltpu


def _round_up(n, m):
    return ((n + m - 1) // m) * m


def _mlp_kernel(x_ref, w1_ref, b1_ref, w2_ref, b2_ref, o_ref):
    # Fused 2-layer MLP tile: bf16 MXU operands, f32 accumulation, f32 epilogue.
    x = x_ref[...]                                              # (tb, in_p) bf16
    h = jnp.dot(x, w1_ref[...], preferred_element_type=jnp.float32)
    h = jnp.maximum(h + b1_ref[...], 0.0)                       # f32, VPU
    o = jnp.dot(h.astype(w2_ref.dtype), w2_ref[...],
                preferred_element_type=jnp.float32)
    o = jnp.maximum(o + b2_ref[...], 0.0)                       # f32, VPU
    o_ref[...] = o.astype(o_ref.dtype)


@functools.partial(jax.jit, static_argnames=("block_b",))
def network_forward(x, w1, b1, w2, b2, block_b=256):
    """relu(relu(x @ w1 + b1) @ w2 + b2).  Weights in (in, out) layout."""
    B, in_dim = x.shape
    hidden = w1.shape[1]
    out_dim = w2.shape[1]
    out_dtype = x.dtype
    b1 = b1.reshape(1, -1).astype(jnp.float32)
    b2 = b2.reshape(1, -1).astype(jnp.float32)

    # Lane-align feature dims to 128 (dense MXU passes + unmasked stores) and
    # pad the batch up to the tile so any B works.
    in_p = _round_up(in_dim, 128)
    hid_p = _round_up(hidden, 128)
    out_p = _round_up(out_dim, 128)
    tb = min(block_b, _round_up(B, 8))            # batch tile (MXU rows), >=8
    B_p = _round_up(B, tb)

    x_p = jnp.pad(x, ((0, B_p - B), (0, in_p - in_dim))).astype(jnp.bfloat16)
    w1_p = jnp.pad(w1, ((0, in_p - in_dim), (0, hid_p - hidden))).astype(jnp.bfloat16)
    b1_p = jnp.pad(b1, ((0, 0), (0, hid_p - hidden)))
    w2_p = jnp.pad(w2, ((0, hid_p - hidden), (0, out_p - out_dim))).astype(jnp.bfloat16)
    b2_p = jnp.pad(b2, ((0, 0), (0, out_p - out_dim)))

    grid = (B_p // tb,)
    out = pl.pallas_call(
        _mlp_kernel,
        out_shape=jax.ShapeDtypeStruct((B_p, out_p), out_dtype),
        grid_spec=pltpu.PrefetchScalarGridSpec(
            num_scalar_prefetch=0,
            grid=grid,
            in_specs=[
                pl.BlockSpec((tb, in_p), lambda i: (i, 0)),      # x tile
                pl.BlockSpec((in_p, hid_p), lambda i: (0, 0)),   # W1 (grid-invariant)
                pl.BlockSpec((1, hid_p), lambda i: (0, 0)),      # b1
                pl.BlockSpec((hid_p, out_p), lambda i: (0, 0)),  # W2 (grid-invariant)
                pl.BlockSpec((1, out_p), lambda i: (0, 0)),      # b2
            ],
            out_specs=pl.BlockSpec((tb, out_p), lambda i: (i, 0)),
        ),
        compiler_params=pltpu.CompilerParams(
            dimension_semantics=("parallel",)),
    )(x_p, w1_p, b1_p, w2_p, b2_p)

    # Strip batch + lane padding.  Padded logit columns are relu(0)=0; slicing
    # them off here keeps the y-path cross-entropy correct.
    return out[:B, :out_dim]


def network_loss(x, y, w1, b1, w2, b2, block_b=256):
    """Optional y-path: F.cross_entropy(relu-logits, y)."""
    # TODO(synk): logsumexp/label-gather kept outside the kernel (thin tail op
    # on a (B, 10) array; fusing it would not move the roofline).
    logits = network_forward(x, w1, b1, w2, b2, block_b=block_b).astype(jnp.float32)
    logz = jax.nn.logsumexp(logits, axis=-1)
    picked = jnp.take_along_axis(logits, y[:, None], axis=-1)[:, 0]
    return jnp.mean(logz - picked)


def init_params(key, input_size, hidden_size, output_size, dtype=jnp.float32):
    # Mimics nn.Linear's U(-1/sqrt(fan_in), 1/sqrt(fan_in)) init, weights (in, out).
    k1, k2, k3, k4 = jax.random.split(key, 4)
    lim1 = 1.0 / jnp.sqrt(jnp.float32(input_size))
    lim2 = 1.0 / jnp.sqrt(jnp.float32(hidden_size))
    w1 = jax.random.uniform(k1, (input_size, hidden_size), dtype, -lim1, lim1)
    b1 = jax.random.uniform(k2, (1, hidden_size), dtype, -lim1, lim1)
    w2 = jax.random.uniform(k3, (hidden_size, output_size), dtype, -lim2, lim2)
    b2 = jax.random.uniform(k4, (1, output_size), dtype, -lim2, lim2)
    return w1, b1, w2, b2


def _ref_forward(x, w1, b1, w2, b2):
    # Plain-JAX reference with the same bf16-operand / f32-accumulation choice.
    h = jnp.dot(x.astype(jnp.bfloat16), w1.astype(jnp.bfloat16),
                preferred_element_type=jnp.float32) + b1
    h = jnp.maximum(h, 0.0)
    o = jnp.dot(h.astype(jnp.bfloat16), w2.astype(jnp.bfloat16),
                preferred_element_type=jnp.float32) + b2
    return jnp.maximum(o, 0.0)


if __name__ == "__main__":
    # MNIST-like small shapes: batch=8, input=256, hidden=128, output=10.
    B, INPUT, HIDDEN, OUTPUT = 8, 256, 128, 10
    key = jax.random.PRNGKey(0)
    kx, kp, ky, kx2 = jax.random.split(key, 4)

    x = jax.random.normal(kx, (B, INPUT), jnp.float32)
    w1, b1, w2, b2 = init_params(kp, INPUT, HIDDEN, OUTPUT)

    out = jax.block_until_ready(network_forward(x, w1, b1, w2, b2))
    ref = _ref_forward(x, w1, b1, w2, b2)
    assert out.shape == (B, OUTPUT)
    assert jnp.allclose(out, ref, atol=1e-2, rtol=1e-2)

    # Non-tile-aligned batch: exercises batch padding + multi-step parallel grid.
    B2 = 300
    x2 = jax.random.normal(kx2, (B2, INPUT), jnp.float32)
    out2 = jax.block_until_ready(network_forward(x2, w1, b1, w2, b2, block_b=256))
    ref2 = _ref_forward(x2, w1, b1, w2, b2)
    assert out2.shape == (B2, OUTPUT)
    assert jnp.allclose(out2, ref2, atol=1e-2, rtol=1e-2)

    # Exercise the y-path (cross-entropy) once.
    y = jax.random.randint(ky, (B,), 0, OUTPUT)
    loss = jax.block_until_ready(network_loss(x, y, w1, b1, w2, b2))
    assert loss.shape == ()

    print("KERNEL_OK")
</pallas_src>

<mosaic_0001>
module attributes {stable_mosaic.version = 11 : i64} {
  func.func @_mlp_kernel(%arg0: i32, %arg1: memref<8x256xbf16, #tpu.memory_space<vmem>>, %arg2: memref<256x128xbf16, #tpu.memory_space<vmem>>, %arg3: memref<1x128xf32, #tpu.memory_space<vmem>>, %arg4: memref<128x128xbf16, #tpu.memory_space<vmem>>, %arg5: memref<1x128xf32, #tpu.memory_space<vmem>>, %arg6: memref<8x128xf32, #tpu.memory_space<vmem>>) attributes {dimension_semantics = [#tpu.dimension_semantics<parallel>], iteration_bounds = array<i64: 1>, scalar_prefetch = 0 : i64, scratch_operands = 0 : i64, tpu.core_type = #tpu.core_type<tc>, window_params = [{transform_indices = @transform_0, window_bounds = array<i64: 8, 256>}, {pipeline_mode = #tpu.pipeline_mode<synchronous>, transform_indices = @transform_1, window_bounds = array<i64: 256, 128>}, {pipeline_mode = #tpu.pipeline_mode<synchronous>, transform_indices = @transform_2, window_bounds = array<i64: 1, 128>}, {pipeline_mode = #tpu.pipeline_mode<synchronous>, transform_indices = @transform_3, window_bounds = array<i64: 128, 128>}, {pipeline_mode = #tpu.pipeline_mode<synchronous>, transform_indices = @transform_4, window_bounds = array<i64: 1, 128>}, {transform_indices = @transform_5, window_bounds = array<i64: 8, 128>}]} {
    %c0 = arith.constant 0 : index
    %c0_0 = arith.constant 0 : index
    %0 = vector.load %arg1[%c0, %c0_0] : memref<8x256xbf16, #tpu.memory_space<vmem>>, vector<8x256xbf16>
    %c0_1 = arith.constant 0 : index
    %c0_2 = arith.constant 0 : index
    %1 = vector.load %arg2[%c0_1, %c0_2] : memref<256x128xbf16, #tpu.memory_space<vmem>>, vector<256x128xbf16>
    %cst = arith.constant dense<0.000000e+00> : vector<8x128xf32>
    %2 = tpu.matmul %0, %1, %cst {dimension_numbers = #tpu.dot_dimension_numbers<[1], [0], [0], [1], [0, 0, 1, 1], [], []>} : vector<8x256xbf16>, vector<256x128xbf16>, vector<8x128xf32> -> vector<8x128xf32>
    %c0_3 = arith.constant 0 : index
    %c0_4 = arith.constant 0 : index
    %3 = vector.load %arg3[%c0_3, %c0_4] : memref<1x128xf32, #tpu.memory_space<vmem>>, vector<1x128xf32>
    %4 = vector.broadcast %3 : vector<1x128xf32> to vector<8x128xf32>
    %5 = arith.addf %2, %4 : vector<8x128xf32>
    %cst_5 = arith.constant 0.000000e+00 : f32
    %6 = vector.broadcast %cst_5 : f32 to vector<8x128xf32>
    %7 = arith.maximumf %5, %6 : vector<8x128xf32>
    %8 = arith.truncf %7 : vector<8x128xf32> to vector<8x128xbf16>
    %c0_6 = arith.constant 0 : index
    %c0_7 = arith.constant 0 : index
    %9 = vector.load %arg4[%c0_6, %c0_7] : memref<128x128xbf16, #tpu.memory_space<vmem>>, vector<128x128xbf16>
    %cst_8 = arith.constant dense<0.000000e+00> : vector<8x128xf32>
    %10 = tpu.matmul %8, %9, %cst_8 {dimension_numbers = #tpu.dot_dimension_numbers<[1], [0], [0], [1], [0, 0, 1, 1], [], []>} : vector<8x128xbf16>, vector<128x128xbf16>, vector<8x128xf32> -> vector<8x128xf32>
    %c0_9 = arith.constant 0 : index
    %c0_10 = arith.constant 0 : index
    %11 = vector.load %arg5[%c0_9, %c0_10] : memref<1x128xf32, #tpu.memory_space<vmem>>, vector<1x128xf32>
    %12 = vector.broadcast %11 : vector<1x128xf32> to vector<8x128xf32>
    %13 = arith.addf %10, %12 : vector<8x128xf32>
    %cst_11 = arith.constant 0.000000e+00 : f32
    %14 = vector.broadcast %cst_11 : f32 to vector<8x128xf32>
    %15 = arith.maximumf %13, %14 : vector<8x128xf32>
    %c0_12 = arith.constant 0 : index
    %c0_13 = arith.constant 0 : index
    %16 = vector.load %arg6[%c0_12, %c0_13] : memref<8x128xf32, #tpu.memory_space<vmem>>, vector<8x128xf32>
    tpu.vector_store %arg6[%c0_12, %c0_13], %15 {strides = array<i32>} : memref<8x128xf32, #tpu.memory_space<vmem>>, vector<8x128xf32>,
    return
  }
  func.func @transform_0(%arg0: i32) -> (i32, i32) {
    %c0_i32 = arith.constant 0 : i32
    %c0_i32_0 = arith.constant 0 : i32
    return %arg0, %c0_i32 : i32, i32
  }
  func.func @transform_1(%arg0: i32) -> (i32, i32) {
    %c0_i32 = arith.constant 0 : i32
    %c0_i32_0 = arith.constant 0 : i32
    %c0_i32_1 = arith.constant 0 : i32
    return %c0_i32, %c0_i32_0 : i32, i32
  }
  func.func @transform_2(%arg0: i32) -> (i32, i32) {
    %c0_i32 = arith.constant 0 : i32
    %c0_i32_0 = arith.constant 0 : i32
    %c0_i32_1 = arith.constant 0 : i32
    return %c0_i32, %c0_i32_0 : i32, i32
  }
  func.func @transform_3(%arg0: i32) -> (i32, i32) {
    %c0_i32 = arith.constant 0 : i32
    %c0_i32_0 = arith.constant 0 : i32
    %c0_i32_1 = arith.constant 0 : i32
    return %c0_i32, %c0_i32_0 : i32, i32
  }
  func.func @transform_4(%arg0: i32) -> (i32, i32) {
    %c0_i32 = arith.constant 0 : i32
    %c0_i32_0 = arith.constant 0 : i32
    %c0_i32_1 = arith.constant 0 : i32
    return %c0_i32, %c0_i32_0 : i32, i32
  }
  func.func @transform_5(%arg0: i32) -> (i32, i32) {
    %c0_i32 = arith.constant 0 : i32
    %c0_i32_0 = arith.constant 0 : i32
    return %arg0, %c0_i32 : i32, i32
  }
}

</mosaic_0001>

<bundles_post_ra>
// kernel: network_forward.1
= control target key start
LH: loop header
LB: loop body
LE: loop exit
PB: predicated region body
PF: predicated region fallthrough
CT: control target
= control target key end

     0   :  { %s552_s0 = inlined_call_operand.vmem [shape: bf16[8,256], index: 0, kind: input, shape index: {}]   ;;  %s553_s1 = inlined_call_operand.vmem [shape: bf16[256,128], index: 1, kind: input, shape index: {}]   ;;  %s554_s2 = inlined_call_operand.vmem [shape: f32[1,128], index: 2, kind: input, shape index: {}]   ;;  %s555_s3 = inlined_call_operand.vmem [shape: bf16[128,128], index: 3, kind: input, shape index: {}]   ;;  %s556_s4 = inlined_call_operand.vmem [shape: f32[1,128], index: 4, kind: input, shape index: {}]   ;;  %s557_s5 = inlined_call_operand.hbm [shape: f32[8,128], index: 5, kind: output, shape index: {}]  }
   0x1   :  { %v391_v0 = vld [vmem:[%s553_s1 + $0x38] sm:$0xff]  ;;  %v390_v2 = vld [vmem:[%s553_s1 + $0x30] sm:$0xff]  ;;  %v389_v5 = vld [vmem:[%s553_s1 + $0x28] sm:$0xff] }
   0x2   :  { %v399_v1 = vld [vmem:[%s553_s1 + $0x78] sm:$0xff]  ;;  %161 = vmatpush.bf16.msra.mxu0 %v391_v0  ;;  %v398_v3 = vld [vmem:[%s553_s1 + $0x70] sm:$0xff]  ;;  %v397_v6 = vld [vmem:[%s553_s1 + $0x68] sm:$0xff] }
   0x3   :  { %174 = vmatpush.bf16.msra.mxu1 %v399_v1  ;;  %v407_v4 = vld [vmem:[%s555_s3 + $0x38] sm:$0xff]  ;;  %v406_v7 = vld [vmem:[%s555_s3 + $0x30] sm:$0xff] }
   0x4   :  { %257 = vmatpush.bf16.msra.mxu2 %v407_v4 }
   0x6   :  { %162 = vmatpush.bf16.msra.mxu0 %v390_v2 }
   0x7   :  { %175 = vmatpush.bf16.msra.mxu1 %v398_v3 }
   0x8   :  { %10 = vsyncpa [#allocation3], 0  ;;  %v388_v8 = vld [vmem:[%s553_s1 + $0x20] sm:$0xff]  ;;  %258 = vmatpush.bf16.msra.mxu2 %v406_v7  ;;  %v405_v10 = vld [vmem:[%s555_s3 + $0x28] sm:$0xff] }
   0x9   :  { %v396_v9 = vld [vmem:[%s553_s1 + $0x60] sm:$0xff]  ;;  %v387_v11 = vld [vmem:[%s553_s1 + $0x18] sm:$0xff]  ;;  %v386_v14 = vld [vmem:[%s553_s1 + $0x10] sm:$0xff] }
   0xa   :  { %163 = vmatpush.bf16.msra.mxu0 %v389_v5  ;;  %v395_v12 = vld [vmem:[%s553_s1 + $0x58] sm:$0xff]  ;;  %v404_v13 = vld [vmem:[%s555_s3 + $0x20] sm:$0xff]  ;;  %v394_v15 = vld [vmem:[%s553_s1 + $0x50] sm:$0xff] }
   0xb   :  { %176 = vmatpush.bf16.msra.mxu1 %v397_v6  ;;  %v403_v16 = vld [vmem:[%s555_s3 + $0x18] sm:$0xff]  ;;  %v385_v17 = vld [vmem:[%s553_s1 + $0x8] sm:$0xff]  ;;  %v21_v19 = vld [vmem:[%s552_s0] sm:$0xff] }
   0xc   :  { %259 = vmatpush.bf16.msra.mxu2 %v405_v10  ;;  %v393_v18 = vld [vmem:[%s553_s1 + $0x48] sm:$0xff]  ;;  %v402_v20 = vld [vmem:[%s555_s3 + $0x10] sm:$0xff]  ;;  %v59_v21 = vunpack.c.l.b16 %v21_v19  ;;  %v60_v22 = vunpack.c.h.b16 %v21_v19  ;;  %v384_v23 = vld [vmem:[%s553_s1] sm:$0xff] }
   0xd   :  { %v392_v24 = vld [vmem:[%s553_s1 + $0x40] sm:$0xff]  ;;  %v401_v27 = vld [vmem:[%s555_s3 + $0x8] sm:$0xff] }
   0xe   :  { %164 = vmatpush.bf16.msra.mxu0 %v388_v8  ;;  %v61_v25 = vpack.c.b16 %v59_v21, %v59_v21  ;;  %v62_v26 = vpack.c.b16 %v60_v22, %v60_v22  ;;  %v400_v28 = vld [vmem:[%s555_s3] sm:$0xff]  ;;  %s437_s3 = smov [#allocation2]  }
   0xf   :  { %177 = vmatpush.bf16.msra.mxu1 %v396_v9  ;;  %v409_v29 = vld [vmem:[%s554_s2] ss:$0 sm:$0xff]  ;;  %s277_s20 = sshll.u32 %s437_s3, 4  ;;  %s279_s2 = sshll.u32 %s557_s5, 4  ;;  %s278_s20 = int_to_ptr.vmem [resolvable:$true] %s277_s20  ;;  %s280_s2 = int_to_ptr.hbm [resolvable:$true] %s279_s2 }
  0x10   :  { %260 = vmatpush.bf16.msra.mxu2 %v404_v13  ;;  %v410_v38 = vld [vmem:[%s556_s4] ss:$0 sm:$0xff] }
  0x12   :  { %165 = vmatpush.bf16.msra.mxu0 %v387_v11 }
  0x13   :  { %178 = vmatpush.bf16.msra.mxu1 %v395_v12 }
  0x14   :  { %261 = vmatpush.bf16.msra.mxu2 %v403_v16 }
  0x16   :  { %166 = vmatpush.bf16.msra.mxu0 %v386_v14 }
  0x17   :  { %179 = vmatpush.bf16.msra.mxu1 %v394_v15 }
  0x18   :  { %262 = vmatpush.bf16.msra.mxu2 %v402_v20 }
  0x1a   :  { %167 = vmatpush.bf16.msra.mxu0 %v385_v17 }
  0x1b   :  { %180 = vmatpush.bf16.msra.mxu1 %v393_v18 }
  0x1c   :  { %263 = vmatpush.bf16.msra.mxu2 %v401_v27 }
  0x1e   :  { %168 = vmatpush.bf16.msra.mxu0 %v384_v23 }
  0x1f   :  { %181 = vmatpush.bf16.msra.mxu1 %v392_v24 }
  0x20   :  { %264 = vmatpush.bf16.msra.mxu2 %v400_v28 }
  0x21   :  { %169 = vmatmul.bf16.vlgmr.msra.gmra.mxu0 %v61_v25 }
  0x22   :  { %182 = vmatmul.bf16.vlgmr.msra.gmra.mxu1 %v62_v26 }
  0x9e   :  { %v170_v30 = vpop.f32.mrf.mxu0 }
  0x9f   :  { %v183_v31 = vpop.f32.mrf.mxu1  ;;  %v171_v32 = vadd.f32 %v409_v29, %v170_v30 }
  0xa1   :  { %v184_v33 = vadd.f32 %v183_v31, %v171_v32 }
  0xa3   :  { %v187_v34 = vmax.f32 %v184_v33, 0.0 }
  0xa5   :  { %v188_v35 = vpack.c.bf16 %v187_v34, %v187_v34 }
  0xa6   :  { %v172_v36 = vpop.f32.mrf.mxu0 }
  0xa7   :  { %v185_v37 = vpop.f32.mrf.mxu1  ;;  %265 = vmatmul.bf16.vlgmr.msra.gmra.mxu2 %v188_v35 }
 0x12a   :  { %v266_v39 = vpop.f32.mrf.mxu2 }
 0x12b   :  { %v267_v40 = vadd.f32 %v410_v38, %v266_v39 }
 0x12d   :  { %v270_v41 = vmax.f32 %v267_v40, 0.0 }
 0x12f   :  { %271 = vst [vmem:[#allocation2] sm:$0xff] %v270_v41 }
 0x130   :  { %282 = dma.vmem_to_hbm [thread:$0]  %s278_s20, 128, %s280_s2, [#allocation3]  }
 0x132   :  { %v268_v42 = vpop.f32.mrf.mxu2 }
 0x133   :  { %435 = dma.done.wait [#allocation3], 128  }
 0x134   :  { %436 = vsyncadd [#allocation3], 4294967168 }
 0x135   :  { %287 = vsyncpa [#allocation3], 1 }

</bundles_post_ra>
